<compile_context>
chip_gen: v7x
topology: tpu7x:2x2x1
jax: 0.10.0
libtpu: 0.0.40
codegen_flags: <defaults>
</compile_context>

<pallas_src>
import jax
import jax.numpy as jnp
from jax.experimental import pallas as pl
from jax.experimental.pallas import tpu as pltpu

EPS = 1e-5
NEG_SLOPE = 0.01  # nn.LeakyReLU default

# Layer widths of the discriminator MLP.
_D1, _D2, _D3, _D4 = 30, 15, 6, 2

# Row offsets of w2 / w3 / w4 inside the packed weight slab (8-aligned starts).
_W2_ROW, _W3_ROW, _W4_ROW = 0, 32, 48
_WSLAB_SHAPE = (56, 16)
_VEC_SLAB_SHAPE = (8, 128)


def _make_kernel(n_valid, padded_batch):
    """Build the fused discriminator kernel for a given (static) batch size."""
    needs_mask = n_valid != padded_batch

    def kernel(x_ref, w1_ref, wslab_ref, vec_ref, o_ref):
        # GradientReverse is the identity in the forward pass.
        x = x_ref[...]
        w1 = w1_ref[...]

        # Static slices of the packed parameter slabs (each slab is one DMA).
        w2 = wslab_ref[_W2_ROW:_W2_ROW + _D1, 0:_D2]
        w3 = wslab_ref[_W3_ROW:_W3_ROW + _D2, 0:_D3]
        w4 = wslab_ref[_W4_ROW:_W4_ROW + _D3, 0:_D4]
        g1, be1 = vec_ref[0:1, 0:_D1], vec_ref[1:2, 0:_D1]
        g2, be2 = vec_ref[2:3, 0:_D2], vec_ref[3:4, 0:_D2]
        g3, be3 = vec_ref[4:5, 0:_D3], vec_ref[5:6, 0:_D3]
        b4 = vec_ref[6:7, 0:_D4]

        if needs_mask:
            row = jax.lax.broadcasted_iota(jnp.int32, (padded_batch, 1), 0)
            valid = row < n_valid
            inv_n = 1.0 / float(n_valid)
        else:
            valid = None
            inv_n = 1.0 / float(padded_batch)

        def bn_act(h, gamma, beta):
            # Training-mode BatchNorm1d (batch mean, biased variance) fused into
            # a single per-feature scale/shift, followed by LeakyReLU(0.01).
            if valid is None:
                mean = jnp.sum(h, axis=0, keepdims=True) * inv_n
                d = h - mean
                var = jnp.sum(d * d, axis=0, keepdims=True) * inv_n
            else:
                hm = jnp.where(valid, h, 0.0)
                mean = jnp.sum(hm, axis=0, keepdims=True) * inv_n
                d = jnp.where(valid, h - mean, 0.0)
                var = jnp.sum(d * d, axis=0, keepdims=True) * inv_n
            scale = gamma * jax.lax.rsqrt(var + EPS)   # rsqrt -> EUP (free slot)
            shift = beta - mean * scale
            h = h * scale + shift
            return jnp.where(h > 0, h, NEG_SLOPE * h)

        # NOTE: Linear biases b1/b2/b3 are mathematically dead under
        # training-mode BatchNorm (mean subtraction removes any per-feature
        # constant), so they are never shipped to the kernel.
        h = jnp.dot(x, w1, preferred_element_type=jnp.float32)
        h = bn_act(h, g1, be1)
        h = jnp.dot(h, w2, preferred_element_type=jnp.float32)
        h = bn_act(h, g2, be2)
        h = jnp.dot(h, w3, preferred_element_type=jnp.float32)
        h = bn_act(h, g3, be3)
        h = jnp.dot(h, w4, preferred_element_type=jnp.float32) + b4
        o_ref[...] = h.astype(o_ref.dtype)

    return kernel


def _pack_params(params):
    """Pack weights (w2/w3/w4) and all (1,N) vectors into two small slabs."""
    (w1, _b1), (g1, be1), (w2, _b2), (g2, be2), (w3, _b3), (g3, be3), (w4, b4) = params
    wslab = jnp.zeros(_WSLAB_SHAPE, jnp.float32)
    wslab = wslab.at[_W2_ROW:_W2_ROW + _D1, 0:_D2].set(w2)
    wslab = wslab.at[_W3_ROW:_W3_ROW + _D2, 0:_D3].set(w3)
    wslab = wslab.at[_W4_ROW:_W4_ROW + _D3, 0:_D4].set(w4)

    vecs = jnp.zeros(_VEC_SLAB_SHAPE, jnp.float32)
    vecs = vecs.at[0, 0:_D1].set(g1[0])
    vecs = vecs.at[1, 0:_D1].set(be1[0])
    vecs = vecs.at[2, 0:_D2].set(g2[0])
    vecs = vecs.at[3, 0:_D2].set(be2[0])
    vecs = vecs.at[4, 0:_D3].set(g3[0])
    vecs = vecs.at[5, 0:_D3].set(be3[0])
    vecs = vecs.at[6, 0:_D4].set(b4[0])
    return w1, wslab, vecs


def init_params(key, input_dim):
    """Deterministic parameter init mimicking PyTorch Linear defaults
    (uniform +-1/sqrt(fan_in)); BN gamma=1, beta=0."""
    dims = [input_dim, _D1, _D2, _D3, _D4]
    params = []
    for i in range(4):
        fan_in, fan_out = dims[i], dims[i + 1]
        key, kw, kb = jax.random.split(key, 3)
        bound = 1.0 / (fan_in ** 0.5)
        # Stored already transposed: (in, out), so the kernel does x @ W + b.
        w = jax.random.uniform(kw, (fan_in, fan_out), jnp.float32, -bound, bound)
        b = jax.random.uniform(kb, (1, fan_out), jnp.float32, -bound, bound)
        params.append((w, b))
        if i < 3:  # BatchNorm affine params follow the first three Linear layers
            params.append((jnp.ones((1, fan_out), jnp.float32),
                           jnp.zeros((1, fan_out), jnp.float32)))
    return params


def adult_census_region_discriminator(x, alpha, params):
    # alpha only affects the backward pass (gradient reversal); forward ignores it.
    del alpha
    batch, input_dim = x.shape
    w1, wslab, vecs = _pack_params(params)

    # Pad batch to a sublane multiple (8) so loads/stores and the axis-0 BN
    # reductions stay unmasked; the kernel corrects the stats for padding.
    pad = (-batch) % 8
    padded_batch = batch + pad
    if pad:
        x = jnp.pad(x, ((0, pad), (0, 0)))

    flops = 2 * padded_batch * (input_dim * _D1 + _D1 * _D2 + _D2 * _D3 + _D3 * _D4)
    bytes_accessed = 4 * (
        padded_batch * input_dim + padded_batch * _D4 + input_dim * _D1
        + _WSLAB_SHAPE[0] * _WSLAB_SHAPE[1] + _VEC_SLAB_SHAPE[0] * _VEC_SLAB_SHAPE[1])

    vmem_spec = pl.BlockSpec(memory_space=pltpu.MemorySpace.VMEM)
    out = pl.pallas_call(
        _make_kernel(batch, padded_batch),
        out_shape=jax.ShapeDtypeStruct((padded_batch, _D4), jnp.float32),
        in_specs=[vmem_spec] * 4,
        out_specs=vmem_spec,
        compiler_params=pltpu.CompilerParams(
            # Whole batch must be VMEM-resident for correct whole-batch BN
            # statistics.  32 MiB fits every generation's scoped default;
            # the batch ceiling must be re-derived per chip (128 MiB on
            # v5e/v6e, 64 MiB on v7x).
            vmem_limit_bytes=32 * 1024 * 1024,
        ),
        cost_estimate=pl.CostEstimate(
            flops=flops,
            transcendentals=_D1 + _D2 + _D3,   # three per-feature rsqrt rows
            bytes_accessed=bytes_accessed,
        ),
    )(x, w1, wslab, vecs)
    return out[:batch]


def reference_forward(x, params):
    """Pure-JAX reference with full PyTorch semantics (biases kept, unfused BN)."""
    (w1, b1), (g1, be1), (w2, b2), (g2, be2), (w3, b3), (g3, be3), (w4, b4) = params

    def bn(h, gamma, beta):
        mean = jnp.mean(h, axis=0, keepdims=True)
        var = jnp.mean((h - mean) ** 2, axis=0, keepdims=True)
        return (h - mean) * jax.lax.rsqrt(var + EPS) * gamma + beta

    def lrelu(h):
        return jnp.where(h > 0, h, NEG_SLOPE * h)

    h = lrelu(bn(x @ w1 + b1, g1, be1))
    h = lrelu(bn(h @ w2 + b2, g2, be2))
    h = lrelu(bn(h @ w3 + b3, g3, be3))
    return h @ w4 + b4


if __name__ == "__main__":
    key = jax.random.PRNGKey(0)
    k_in, k_params = jax.random.split(key)

    input_dim = 32
    alpha = 1.0
    params = init_params(k_params, input_dim)

    # batch=8 exercises the unpadded path; batch=6 exercises the padded
    # (masked BN statistics) path.
    for batch in (8, 6):
        x = jax.random.normal(jax.random.fold_in(k_in, batch),
                              (batch, input_dim), jnp.float32)
        out = adult_census_region_discriminator(x, alpha, params)
        out = jax.block_until_ready(out)
        ref = reference_forward(x, params)
        assert out.shape == (batch, 2), out.shape
        assert jnp.allclose(out, ref, atol=1e-4, rtol=1e-4), (batch, out, ref)

    print("KERNEL_OK")
</pallas_src>

<mosaic_0001>
module attributes {stable_mosaic.version = 11 : i64} {
  func.func @kernel(%arg0: memref<8x32xf32, #tpu.memory_space<vmem>>, %arg1: memref<32x30xf32, #tpu.memory_space<vmem>>, %arg2: memref<56x16xf32, #tpu.memory_space<vmem>>, %arg3: memref<8x128xf32, #tpu.memory_space<vmem>>, %arg4: memref<8x2xf32, #tpu.memory_space<vmem>>) attributes {dimension_semantics = [], scalar_prefetch = 0 : i64, scratch_operands = 0 : i64, tpu.core_type = #tpu.core_type<tc>} {
    %c0 = arith.constant 0 : index
    %c0_0 = arith.constant 0 : index
    %0 = vector.load %arg0[%c0, %c0_0] : memref<8x32xf32, #tpu.memory_space<vmem>>, vector<8x32xf32>
    %c0_1 = arith.constant 0 : index
    %c0_2 = arith.constant 0 : index
    %1 = vector.load %arg1[%c0_1, %c0_2] : memref<32x30xf32, #tpu.memory_space<vmem>>, vector<32x30xf32>
    %c0_3 = arith.constant 0 : index
    %c0_4 = arith.constant 0 : index
    %2 = vector.load %arg2[%c0_3, %c0_4] : memref<56x16xf32, #tpu.memory_space<vmem>>, vector<30x15xf32>
    %c32 = arith.constant 32 : index
    %c0_5 = arith.constant 0 : index
    %3 = vector.load %arg2[%c32, %c0_5] : memref<56x16xf32, #tpu.memory_space<vmem>>, vector<15x6xf32>
    %c48 = arith.constant 48 : index
    %c0_6 = arith.constant 0 : index
    %4 = vector.load %arg2[%c48, %c0_6] : memref<56x16xf32, #tpu.memory_space<vmem>>, vector<6x2xf32>
    %c0_7 = arith.constant 0 : index
    %c0_8 = arith.constant 0 : index
    %5 = vector.load %arg3[%c0_7, %c0_8] : memref<8x128xf32, #tpu.memory_space<vmem>>, vector<1x30xf32>
    %c1 = arith.constant 1 : index
    %c0_9 = arith.constant 0 : index
    %6 = vector.load %arg3[%c1, %c0_9] : memref<8x128xf32, #tpu.memory_space<vmem>>, vector<1x30xf32>
    %c2 = arith.constant 2 : index
    %c0_10 = arith.constant 0 : index
    %7 = vector.load %arg3[%c2, %c0_10] : memref<8x128xf32, #tpu.memory_space<vmem>>, vector<1x15xf32>
    %c3 = arith.constant 3 : index
    %c0_11 = arith.constant 0 : index
    %8 = vector.load %arg3[%c3, %c0_11] : memref<8x128xf32, #tpu.memory_space<vmem>>, vector<1x15xf32>
    %c4 = arith.constant 4 : index
    %c0_12 = arith.constant 0 : index
    %9 = vector.load %arg3[%c4, %c0_12] : memref<8x128xf32, #tpu.memory_space<vmem>>, vector<1x6xf32>
    %c5 = arith.constant 5 : index
    %c0_13 = arith.constant 0 : index
    %10 = vector.load %arg3[%c5, %c0_13] : memref<8x128xf32, #tpu.memory_space<vmem>>, vector<1x6xf32>
    %c6 = arith.constant 6 : index
    %c0_14 = arith.constant 0 : index
    %11 = vector.load %arg3[%c6, %c0_14] : memref<8x128xf32, #tpu.memory_space<vmem>>, vector<1x2xf32>
    %cst = arith.constant dense<0.000000e+00> : vector<8x30xf32>
    %12 = tpu.matmul %0, %1, %cst {dimension_numbers = #tpu.dot_dimension_numbers<[1], [0], [0], [1], [0, 0, 1, 1], [], []>} : vector<8x32xf32>, vector<32x30xf32>, vector<8x30xf32> -> vector<8x30xf32>
    %cst_15 = arith.constant dense<0.000000e+00> : vector<30xf32>
    %13 = vector.multi_reduction <add>, %12, %cst_15 [0] : vector<8x30xf32> to vector<30xf32>
    %14 = vector.shape_cast %13 : vector<30xf32> to vector<1x30xf32>
    %cst_16 = arith.constant 1.250000e-01 : f32
    %15 = vector.broadcast %cst_16 : f32 to vector<1x30xf32>
    %16 = arith.mulf %14, %15 : vector<1x30xf32>
    %17 = vector.broadcast %16 : vector<1x30xf32> to vector<8x30xf32>
    %18 = arith.subf %12, %17 : vector<8x30xf32>
    %19 = arith.mulf %18, %18 : vector<8x30xf32>
    %cst_17 = arith.constant dense<0.000000e+00> : vector<30xf32>
    %20 = vector.multi_reduction <add>, %19, %cst_17 [0] : vector<8x30xf32> to vector<30xf32>
    %21 = vector.shape_cast %20 : vector<30xf32> to vector<1x30xf32>
    %cst_18 = arith.constant 1.250000e-01 : f32
    %22 = vector.broadcast %cst_18 : f32 to vector<1x30xf32>
    %23 = arith.mulf %21, %22 : vector<1x30xf32>
    %cst_19 = arith.constant 9.99999974E-6 : f32
    %24 = vector.broadcast %cst_19 : f32 to vector<1x30xf32>
    %25 = arith.addf %23, %24 : vector<1x30xf32>
    %26 = math.rsqrt %25 : vector<1x30xf32>
    %27 = arith.mulf %5, %26 : vector<1x30xf32>
    %28 = arith.mulf %16, %27 : vector<1x30xf32>
    %29 = arith.subf %6, %28 : vector<1x30xf32>
    %30 = vector.broadcast %27 : vector<1x30xf32> to vector<8x30xf32>
    %31 = arith.mulf %12, %30 : vector<8x30xf32>
    %32 = vector.broadcast %29 : vector<1x30xf32> to vector<8x30xf32>
    %33 = arith.addf %31, %32 : vector<8x30xf32>
    %cst_20 = arith.constant 0.000000e+00 : f32
    %34 = vector.broadcast %cst_20 : f32 to vector<8x30xf32>
    %35 = arith.cmpf ogt, %33, %34 : vector<8x30xf32>
    %cst_21 = arith.constant 0.00999999977 : f32
    %36 = vector.broadcast %cst_21 : f32 to vector<8x30xf32>
    %37 = arith.mulf %36, %33 : vector<8x30xf32>
    %38 = arith.select %35, %33, %37 : vector<8x30xi1>, vector<8x30xf32>
    %cst_22 = arith.constant dense<0.000000e+00> : vector<8x15xf32>
    %39 = tpu.matmul %38, %2, %cst_22 {dimension_numbers = #tpu.dot_dimension_numbers<[1], [0], [0], [1], [0, 0, 1, 1], [], []>} : vector<8x30xf32>, vector<30x15xf32>, vector<8x15xf32> -> vector<8x15xf32>
    %cst_23 = arith.constant dense<0.000000e+00> : vector<15xf32>
    %40 = vector.multi_reduction <add>, %39, %cst_23 [0] : vector<8x15xf32> to vector<15xf32>
    %41 = vector.shape_cast %40 : vector<15xf32> to vector<1x15xf32>
    %cst_24 = arith.constant 1.250000e-01 : f32
    %42 = vector.broadcast %cst_24 : f32 to vector<1x15xf32>
    %43 = arith.mulf %41, %42 : vector<1x15xf32>
    %44 = vector.broadcast %43 : vector<1x15xf32> to vector<8x15xf32>
    %45 = arith.subf %39, %44 : vector<8x15xf32>
    %46 = arith.mulf %45, %45 : vector<8x15xf32>
    %cst_25 = arith.constant dense<0.000000e+00> : vector<15xf32>
    %47 = vector.multi_reduction <add>, %46, %cst_25 [0] : vector<8x15xf32> to vector<15xf32>
    %48 = vector.shape_cast %47 : vector<15xf32> to vector<1x15xf32>
    %cst_26 = arith.constant 1.250000e-01 : f32
    %49 = vector.broadcast %cst_26 : f32 to vector<1x15xf32>
    %50 = arith.mulf %48, %49 : vector<1x15xf32>
    %cst_27 = arith.constant 9.99999974E-6 : f32
    %51 = vector.broadcast %cst_27 : f32 to vector<1x15xf32>
    %52 = arith.addf %50, %51 : vector<1x15xf32>
    %53 = math.rsqrt %52 : vector<1x15xf32>
    %54 = arith.mulf %7, %53 : vector<1x15xf32>
    %55 = arith.mulf %43, %54 : vector<1x15xf32>
    %56 = arith.subf %8, %55 : vector<1x15xf32>
    %57 = vector.broadcast %54 : vector<1x15xf32> to vector<8x15xf32>
    %58 = arith.mulf %39, %57 : vector<8x15xf32>
    %59 = vector.broadcast %56 : vector<1x15xf32> to vector<8x15xf32>
    %60 = arith.addf %58, %59 : vector<8x15xf32>
    %cst_28 = arith.constant 0.000000e+00 : f32
    %61 = vector.broadcast %cst_28 : f32 to vector<8x15xf32>
    %62 = arith.cmpf ogt, %60, %61 : vector<8x15xf32>
    %cst_29 = arith.constant 0.00999999977 : f32
    %63 = vector.broadcast %cst_29 : f32 to vector<8x15xf32>
    %64 = arith.mulf %63, %60 : vector<8x15xf32>
    %65 = arith.select %62, %60, %64 : vector<8x15xi1>, vector<8x15xf32>
    %cst_30 = arith.constant dense<0.000000e+00> : vector<8x6xf32>
    %66 = tpu.matmul %65, %3, %cst_30 {dimension_numbers = #tpu.dot_dimension_numbers<[1], [0], [0], [1], [0, 0, 1, 1], [], []>} : vector<8x15xf32>, vector<15x6xf32>, vector<8x6xf32> -> vector<8x6xf32>
    %cst_31 = arith.constant dense<0.000000e+00> : vector<6xf32>
    %67 = vector.multi_reduction <add>, %66, %cst_31 [0] : vector<8x6xf32> to vector<6xf32>
    %68 = vector.shape_cast %67 : vector<6xf32> to vector<1x6xf32>
    %cst_32 = arith.constant 1.250000e-01 : f32
    %69 = vector.broadcast %cst_32 : f32 to vector<1x6xf32>
    %70 = arith.mulf %68, %69 : vector<1x6xf32>
    %71 = vector.broadcast %70 : vector<1x6xf32> to vector<8x6xf32>
    %72 = arith.subf %66, %71 : vector<8x6xf32>
    %73 = arith.mulf %72, %72 : vector<8x6xf32>
    %cst_33 = arith.constant dense<0.000000e+00> : vector<6xf32>
    %74 = vector.multi_reduction <add>, %73, %cst_33 [0] : vector<8x6xf32> to vector<6xf32>
    %75 = vector.shape_cast %74 : vector<6xf32> to vector<1x6xf32>
    %cst_34 = arith.constant 1.250000e-01 : f32
    %76 = vector.broadcast %cst_34 : f32 to vector<1x6xf32>
    %77 = arith.mulf %75, %76 : vector<1x6xf32>
    %cst_35 = arith.constant 9.99999974E-6 : f32
    %78 = vector.broadcast %cst_35 : f32 to vector<1x6xf32>
    %79 = arith.addf %77, %78 : vector<1x6xf32>
    %80 = math.rsqrt %79 : vector<1x6xf32>
    %81 = arith.mulf %9, %80 : vector<1x6xf32>
    %82 = arith.mulf %70, %81 : vector<1x6xf32>
    %83 = arith.subf %10, %82 : vector<1x6xf32>
    %84 = vector.broadcast %81 : vector<1x6xf32> to vector<8x6xf32>
    %85 = arith.mulf %66, %84 : vector<8x6xf32>
    %86 = vector.broadcast %83 : vector<1x6xf32> to vector<8x6xf32>
    %87 = arith.addf %85, %86 : vector<8x6xf32>
    %cst_36 = arith.constant 0.000000e+00 : f32
    %88 = vector.broadcast %cst_36 : f32 to vector<8x6xf32>
    %89 = arith.cmpf ogt, %87, %88 : vector<8x6xf32>
    %cst_37 = arith.constant 0.00999999977 : f32
    %90 = vector.broadcast %cst_37 : f32 to vector<8x6xf32>
    %91 = arith.mulf %90, %87 : vector<8x6xf32>
    %92 = arith.select %89, %87, %91 : vector<8x6xi1>, vector<8x6xf32>
    %cst_38 = arith.constant dense<0.000000e+00> : vector<8x2xf32>
    %93 = tpu.matmul %92, %4, %cst_38 {dimension_numbers = #tpu.dot_dimension_numbers<[1], [0], [0], [1], [0, 0, 1, 1], [], []>} : vector<8x6xf32>, vector<6x2xf32>, vector<8x2xf32> -> vector<8x2xf32>
    %94 = vector.broadcast %11 : vector<1x2xf32> to vector<8x2xf32>
    %95 = arith.addf %93, %94 : vector<8x2xf32>
    %c0_39 = arith.constant 0 : index
    %c0_40 = arith.constant 0 : index
    %96 = vector.load %arg4[%c0_39, %c0_40] : memref<8x2xf32, #tpu.memory_space<vmem>>, vector<8x2xf32>
    tpu.vector_store %arg4[%c0_39, %c0_40], %95 {strides = array<i32>} : memref<8x2xf32, #tpu.memory_space<vmem>>, vector<8x2xf32>,
    return
  }
}

</mosaic_0001>

<bundles_post_ra>
// kernel: tpu_custom_call.1
= control target key start
LH: loop header
LB: loop body
LE: loop exit
PB: predicated region body
PF: predicated region fallthrough
CT: control target
= control target key end

     0   :  { %v545_v0 = vmov 0.0|0.0   ;;  %vm546_vm0 = vmmov 0   ;;  %v547_v4 = vmov 0.0   ;;  %vm36_vm1 = vcmask 261120   ;;  %s664_s1 = inlined_call_operand.vmem [shape: f32[32,30], index: 1, kind: input, shape index: {}]   ;;  %s665_s0 = inlined_call_operand.vmem [shape: f32[8,32], index: 0, kind: input, shape index: {}]   ;;  %s666_s2 = inlined_call_operand.vmem [shape: f32[56,16], index: 2, kind: input, shape index: {}]   ;;  %s667_s3 = inlined_call_operand.vmem [shape: f32[8,128], index: 3, kind: input, shape index: {}]   ;;  %s668_s4 = inlined_call_operand.vmem [shape: f32[8,2], index: 4, kind: output, shape index: {}]  }
   0x1   :  { %518 = vmatprep.subr.bf16.mxu0 %v545_v0  ;;  %v18_v1 = vld [vmem:[%s664_s1] sm:$0xff]  ;;  %v19_v2 = vld [vmem:[%s664_s1 + $0x8] sm:$0xff]  ;;  %v20_v3 = vld [vmem:[%s664_s1 + $0x10] sm:$0xff]  ;;  %492 = vmatprep.mubr.msk.f32.mxu0 %vm546_vm0, %v547_v4  ;;  %vm150_vm2 = vcmask 1045504   ;;  %vm548_vm3 = vmmov 1   ;;  %vm110_vm5 = vcmask 244736   ;;  %v134_v36 = vlaneseq }
   0x2   :  { %v519_v5 = vpack.c.bf16 %v19_v2, %v18_v1  ;;  %v21_v6 = vld [vmem:[%s664_s1 + $0x18] sm:$0xff]  ;;  %524 = vmatprep.subr.bf16.mxu1 %v545_v0  ;;  %503 = vmatprep.mubr.msk.f32.mxu1 %vm546_vm0, %v547_v4  ;;  %v17_v8 = vld [vmem:[%s665_s0] sm:$0xff]  ;;  %v23_v10 = vld [vmem:[%s666_s2 + $0x8] sm:$0xff]  ;;  %vm264_vm7 = vcmask 1046528   ;;  %vm224_vm9 = vcmask 121856   ;;  %vm338_vm11 = vcmask 48128  }
   0x3   :  { %v522_v7 = vpack.c.bf16 %v21_v6, %v20_v3  ;;  %v22_v9 = vld [vmem:[%s666_s2] sm:$0xff]  ;;  %v24_v12 = vld [vmem:[%s666_s2 + $0x10] sm:$0xff]  ;;  %v25_v13 = vld [vmem:[%s666_s2 + $0x18] sm:$0x3f]  ;;  %v135_v37 = vshrl.u32 %v134_v36, 7  ;;  %vm455_vm13 = vcmask 15360  }
   0x4   :  { %520 = vmatpush3.bf16.msra.mxu0 %v519_v5  ;;  %v525_v11 = vpack.c.bf16 %v23_v10, %v22_v9  ;;  %v528_v14 = vpack.c.bf16 %v25_v13, %v24_v12  ;;  %vm529_vm4 = vmpackc.low %vm150_vm2, %vm548_vm3  ;;  %v29_v38 = vld [vmem:[%s667_s3] sm:$0x1]  ;;  %v30_v42 = vld [vmem:[%s667_s3 + $0x1] sm:$0x1] }
   0x5   :  { %521 = vmatprep.subr.bf16.mxu0 %v545_v0  ;;  %v615_v39 = vsub.s32 0, %v135_v37  ;;  %vm533_vm8 = vmpackc.low %vm264_vm7, %vm548_vm3  ;;  %v26_v51 = vld [vmem:[%s666_s2 + $0x20] sm:$0xff]  ;;  %v27_v52 = vld [vmem:[%s666_s2 + $0x28] sm:$0x7f] }
   0x6   :  { %526 = vmatpush3.bf16.msra.mxu1 %v525_v11  ;;  %v532_v53 = vpack.c.bf16 %v27_v52, %v26_v51  ;;  %v31_v11 = vld [vmem:[%s667_s3 + $0x2] sm:$0x1] }
   0x7   :  { %527 = vmatprep.subr.bf16.mxu1 %v545_v0 }
   0x8   :  { %523 = vmatpush3.bf16.msra.mxu0 %v522_v7 }
   0x9   :  { %531 = vmatprep.subr.bf16.mxu0 %v545_v0 }
   0xa   :  { %530 = vmatpush3.bf16.msk.msra.mxu1 %vm529_vm4, %v528_v14  ;;  %v32_v14 = vld [vmem:[%s667_s3 + $0x3] sm:$0x1] }
   0xb   :  { %493 = vmatmul.mubr.msk.f32.vlgmr.msra.gmra.mrb[0].mxu0 %vm36_vm1, %v17_v8  ;;  %513 = vmatprep.subr.mxu1 %v547_v4 }
   0xc   :  { %510 = vmatprep.mubr.msk.f32.mxu0 %vm546_vm0, %v547_v4  ;;  %534 = vmatpush3.bf16.msk.msra.mxu0 %vm533_vm8, %v532_v53 }
  0xde   :  { %v106_v15 = vpop.f32.mrb[0].mxu0 }
  0xdf   :  { %v111_v16 = vsel %vm110_vm5, %v106_v15, 0.0  ;;  %v494_v17 = vpop.f32.mrb[1].mxu0 }
  0xe0   :  { %v112_v18 = vrot.slane %v111_v16, 4 }
  0xe2   :  { %v113_v19 = vadd.f32 %v112_v18, %v111_v16 }
  0xe4   :  { %v114_v20 = vrot.slane %v113_v19, 2 }
  0xe6   :  { %v115_v21 = vadd.f32 %v114_v20, %v113_v19 }
  0xe8   :  { %v116_v22 = vrot.slane %v115_v21, 1 }
  0xea   :  { %v117_v23 = vadd.f32 %v116_v22, %v115_v21 }
  0xec   :  { %v118_v24 = vmul.f32 0.125, %v117_v23  ;;  %v28_v23 = vld [vmem:[%s666_s2 + $0x30] sm:$0x3f] }
  0xee   :  { %v119_v25 = vsub.f32 %v106_v15, %v118_v24 }
  0xf0   :  { %v120_v26 = vmul.f32 %v119_v25, %v119_v25 }
  0xf2   :  { %v121_v27 = vsel %vm110_vm5, %v120_v26, 0.0 }
  0xf3   :  { %v122_v28 = vrot.slane %v121_v27, 4 }
  0xf5   :  { %v123_v29 = vadd.f32 %v122_v28, %v121_v27 }
  0xf7   :  { %v124_v30 = vrot.slane %v123_v29, 2 }
  0xf9   :  { %v125_v31 = vadd.f32 %v124_v30, %v123_v29 }
  0xfb   :  { %v126_v32 = vrot.slane %v125_v31, 1 }
  0xfd   :  { %v127_v33 = vadd.f32 %v126_v32, %v125_v31 }
  0xff   :  { %v128_v34 = vmul.f32 0.125, %v127_v33 }
 0x101   :  { %v129_v35 = vadd.f32 1e-05, %v128_v34 }
 0x103   :  { %539 = vrsqrt.f32 %v129_v35 }
 0x10d   :  { %v540_v40 = vpop.eup %539 }
 0x10e   :  { %v131_v41 = vmul.f32 %v540_v40, %v29_v38 }
 0x110   :  { %v132_v43 = vmul.f32 %v131_v41, %v118_v24  ;;  %v137_v44 = vrot.slane %v131_v41, %v615_v39 }
 0x112   :  { %v133_v45 = vsub.f32 %v30_v42, %v132_v43  ;;  %v138_v46 = vmul.f32 %v137_v44, %v106_v15 }
 0x114   :  { %v142_v47 = vrot.slane %v133_v45, %v615_v39 }
 0x116   :  { %v143_v48 = vadd.f32 %v142_v47, %v138_v46  ;;  %v33_v46 = vld [vmem:[%s667_s3 + $0x4] sm:$0x1] }
 0x118   :  { %vm144_vm6 = vcmp.gt.f32.partialorder %v143_v48, 0.0  ;;  %v145_v49 = vmul.f32 0.01, %v143_v48 }
 0x11a   :  { %v146_v50 = vsel %vm144_vm6, %v143_v48, %v145_v49  ;;  %v34_v49 = vld [vmem:[%s667_s3 + $0x5] sm:$0x1] }
 0x11b   :  { %504 = vmatmul.mubr.msk.f32.vlgmr.msra.gmra.mrb[0].mxu1 %vm110_vm5, %v146_v50 }
 0x11c   :  { %515 = vmatprep.mubr.msk.f32.mxu1 %vm546_vm0, %v547_v4  ;;  %514 = vmatpush3.msk.msra.mxu1 %vm150_vm2, %v28_v23 }
 0x1ee   :  { %v220_v54 = vpop.f32.mrb[0].mxu1 }
 0x1ef   :  { %v225_v55 = vsel %vm224_vm9, %v220_v54, 0.0  ;;  %v505_v56 = vpop.f32.mrb[1].mxu1 }
 0x1f0   :  { %v226_v57 = vrot.slane %v225_v55, 4 }
 0x1f2   :  { %v227_v58 = vadd.f32 %v226_v57, %v225_v55 }
 0x1f4   :  { %v228_v59 = vrot.slane %v227_v58, 2 }
 0x1f6   :  { %v229_v60 = vadd.f32 %v228_v59, %v227_v58  ;;  %v466_v58 = vld [vmem:[%s667_s3 + $0x6] ss:$0 sm:$0xff] }
 0x1f8   :  { %v230_v61 = vrot.slane %v229_v60, 1 }
 0x1fa   :  { %v231_v62 = vadd.f32 %v230_v61, %v229_v60 }
 0x1fc   :  { %v232_v63 = vmul.f32 0.125, %v231_v62 }
 0x1fe   :  { %v233_v0 = vsub.f32 %v220_v54, %v232_v63 }
 0x200   :  { %v234_v1 = vmul.f32 %v233_v0, %v233_v0 }
 0x202   :  { %v235_v2 = vsel %vm224_vm9, %v234_v1, 0.0 }
 0x203   :  { %v236_v3 = vrot.slane %v235_v2, 4 }
 0x205   :  { %v237_v4 = vadd.f32 %v236_v3, %v235_v2 }
 0x207   :  { %v238_v5 = vrot.slane %v237_v4, 2 }
 0x209   :  { %v239_v6 = vadd.f32 %v238_v5, %v237_v4 }
 0x20b   :  { %v240_v7 = vrot.slane %v239_v6, 1 }
 0x20d   :  { %v241_v8 = vadd.f32 %v240_v7, %v239_v6 }
 0x20f   :  { %v242_v9 = vmul.f32 0.125, %v241_v8 }
 0x211   :  { %v243_v10 = vadd.f32 1e-05, %v242_v9 }
 0x213   :  { %541 = vrsqrt.f32 %v243_v10 }
 0x21d   :  { %v542_v12 = vpop.eup %541 }
 0x21e   :  { %v245_v13 = vmul.f32 %v542_v12, %v31_v11 }
 0x220   :  { %v246_v15 = vmul.f32 %v245_v13, %v232_v63  ;;  %v251_v16 = vrot.slane %v245_v13, %v615_v39 }
 0x222   :  { %v247_v17 = vsub.f32 %v32_v14, %v246_v15  ;;  %v252_v18 = vmul.f32 %v251_v16, %v220_v54 }
 0x224   :  { %v256_v19 = vrot.slane %v247_v17, %v615_v39 }
 0x226   :  { %v257_v20 = vadd.f32 %v256_v19, %v252_v18 }
 0x228   :  { %v259_v21 = vmul.f32 0.01, %v257_v20  ;;  %vm258_vm10 = vcmp.gt.f32.partialorder %v257_v20, 0.0 }
 0x22a   :  { %v260_v22 = vsel %vm258_vm10, %v257_v20, %v259_v21 }
 0x22b   :  { %511 = vmatmul.mubr.msk.f32.vlgmr.msra.gmra.mrb[2].mxu0 %vm224_vm9, %v260_v22 }
 0x2fe   :  { %v334_v24 = vpop.f32.mrb[2].mxu0 }
 0x2ff   :  { %v339_v25 = vsel %vm338_vm11, %v334_v24, 0.0  ;;  %v512_v26 = vpop.f32.mrb[3].mxu0 }
 0x300   :  { %v340_v27 = vrot.slane %v339_v25, 4 }
 0x302   :  { %v341_v28 = vadd.f32 %v340_v27, %v339_v25 }
 0x304   :  { %v342_v29 = vrot.slane %v341_v28, 2 }
 0x306   :  { %v343_v30 = vadd.f32 %v342_v29, %v341_v28 }
 0x308   :  { %v344_v31 = vrot.slane %v343_v30, 1 }
 0x30a   :  { %v345_v32 = vadd.f32 %v344_v31, %v343_v30 }
 0x30c   :  { %v346_v33 = vmul.f32 0.125, %v345_v32 }
 0x30e   :  { %v347_v34 = vsub.f32 %v334_v24, %v346_v33 }
 0x310   :  { %v348_v35 = vmul.f32 %v347_v34, %v347_v34 }
 0x312   :  { %v349_v36 = vsel %vm338_vm11, %v348_v35, 0.0 }
 0x313   :  { %v350_v37 = vrot.slane %v349_v36, 4 }
 0x315   :  { %v351_v38 = vadd.f32 %v350_v37, %v349_v36 }
 0x317   :  { %v352_v40 = vrot.slane %v351_v38, 2 }
 0x319   :  { %v353_v41 = vadd.f32 %v352_v40, %v351_v38 }
 0x31b   :  { %v354_v42 = vrot.slane %v353_v41, 1 }
 0x31d   :  { %v355_v43 = vadd.f32 %v354_v42, %v353_v41 }
 0x31f   :  { %v356_v44 = vmul.f32 0.125, %v355_v43 }
 0x321   :  { %v357_v45 = vadd.f32 1e-05, %v356_v44 }
 0x323   :  { %543 = vrsqrt.f32 %v357_v45 }
 0x32d   :  { %v544_v47 = vpop.eup %543 }
 0x32e   :  { %v359_v48 = vmul.f32 %v544_v47, %v33_v46 }
 0x330   :  { %v360_v50 = vmul.f32 %v359_v48, %v346_v33  ;;  %v365_v51 = vrot.slane %v359_v48, %v615_v39 }
 0x332   :  { %v361_v52 = vsub.f32 %v34_v49, %v360_v50  ;;  %v366_v53 = vmul.f32 %v365_v51, %v334_v24 }
 0x334   :  { %v370_v54 = vrot.slane %v361_v52, %v615_v39 }
 0x336   :  { %v371_v55 = vadd.f32 %v370_v54, %v366_v53 }
 0x338   :  { %v373_v56 = vmul.f32 0.01, %v371_v55  ;;  %vm372_vm12 = vcmp.gt.f32.partialorder %v371_v55, 0.0 }
 0x33a   :  { %v374_v57 = vsel %vm372_vm12, %v371_v55, %v373_v56 }
 0x33b   :  { %516 = vmatmul.mubr.msk.f32.vlgmr.msra.gmra.mrb[2].mxu1 %vm338_vm11, %v374_v57 }
 0x40e   :  { %v451_v59 = vpop.f32.mrb[2].mxu1 }
 0x40f   :  { %v452_v60 = vadd.f32 %v466_v58, %v451_v59  ;;  %v517_v61 = vpop.f32.mrb[3].mxu1 }
 0x411   :  { %456 = vst.msk [vmem:[%s668_s4] sm:$0xff] %vm455_vm13, %v452_v60 }

</bundles_post_ra>
